<compile_context>
chip_gen: v7x
topology: tpu7x:2x2x1
jax: 0.10.0
libtpu: 0.0.40
codegen_flags: <defaults>
</compile_context>

<pallas_src>
import jax
import jax.numpy as jnp
from jax import lax
from jax.experimental import pallas as pl
from jax.experimental.pallas import tpu as pltpu


def _round_up(x, m):
    return ((x + m - 1) // m) * m


# -----------------------------------------------------------------------------
# Kernel: whole T-step decode in one invocation (grid=(1,)), weights resident.
# -----------------------------------------------------------------------------
def decoder_kernel(tok_ref,                 # SMEM (T,) int32   (scalar prefetch)
                   emb_ref,                 # VMEM (Vp, Hp)
                   h0_ref,                  # VMEM (1, Hp)
                   w_ref,                   # VMEM (2*Hp, 4*Hp)  lane blocks r|z|gi_n|gh_n
                   b_ref,                   # VMEM (1, 4*Hp)     fused biases
                   wout_ref,                # VMEM (Hp, Vp)
                   bout_ref,                # VMEM (1, Vp)       padded lanes = -1e30
                   logp_ref,                # out  (T, Vp)
                   hout_ref):               # out  (1, Hp)
    Hp = h0_ref.shape[1]
    T = logp_ref.shape[0]
    n_rows = emb_ref.shape[0]

    def step(t, h):
        tok = jnp.minimum(tok_ref[t], n_rows - 1)            # clamp: no VMEM OOB reads
        x = emb_ref[pl.ds(tok, 1), :]                        # (1, Hp) in-kernel gather

        # --- fused GRU cell: one (1, 2*Hp) x (2*Hp, 4*Hp) MXU dot ------------
        xh = jnp.concatenate([x, h], axis=1)                 # (1, 2*Hp), lane-aligned
        g = jnp.dot(xh, w_ref[...],
                    preferred_element_type=jnp.float32) + b_ref[...]   # (1, 4*Hp)

        r = jax.nn.sigmoid(g[:, 0 * Hp:1 * Hp])              # vreg-boundary slices
        z = jax.nn.sigmoid(g[:, 1 * Hp:2 * Hp])
        n = jnp.tanh(g[:, 2 * Hp:3 * Hp] + r * g[:, 3 * Hp:4 * Hp])
        h_new = (1.0 - z) * n + z * h                        # pad lanes stay exactly 0

        # --- Linear(H, V) + LogSoftmax(dim=1), lane-padded to Vp -------------
        logits = jnp.dot(h_new, wout_ref[...],
                         preferred_element_type=jnp.float32) + bout_ref[...]  # (1, Vp)
        m = jnp.max(logits, axis=-1, keepdims=True)
        s = logits - m
        lse = jnp.log(jnp.sum(jnp.exp(s), axis=-1, keepdims=True))
        logp_ref[pl.ds(t, 1), :] = s - lse                   # row store into resident slab
        return h_new

    h_fin = lax.fori_loop(0, T, step, h0_ref[...], unroll=True)
    hout_ref[...] = h_fin                                    # written once, after the loop


# -----------------------------------------------------------------------------
# Wrappers
# -----------------------------------------------------------------------------
def gru_decode(tokens, hidden, packed):
    """Run T teacher-forced decoder steps inside ONE pallas_call invocation.

    tokens: (T,) int32; hidden: (1, 1, H) f32.
    Returns (log_probs (T, V), final hidden (1, 1, H))."""
    H, Hp, V, Vp = packed["H"], packed["Hp"], packed["V"], packed["Vp"]
    T = int(tokens.shape[0])

    h0 = jnp.zeros((1, Hp), jnp.float32).at[:, :H].set(
        hidden.reshape(1, H).astype(jnp.float32))

    def full(shape):  # whole-array block, constant index -> DMA'd once, VMEM-resident
        return pl.BlockSpec(shape, lambda i, tok, _r=len(shape): (0,) * _r)

    logp_pad, h_fin = pl.pallas_call(
        decoder_kernel,
        out_shape=(
            jax.ShapeDtypeStruct((T, Vp), jnp.float32),
            jax.ShapeDtypeStruct((1, Hp), jnp.float32),
        ),
        grid_spec=pltpu.PrefetchScalarGridSpec(
            num_scalar_prefetch=1,
            grid=(1,),                         # single invocation; T loop is in-kernel
            in_specs=[
                full(packed["emb"].shape),     # (Vp, Hp)
                full((1, Hp)),                 # h0
                full(packed["w"].shape),       # (2*Hp, 4*Hp)
                full(packed["b"].shape),       # (1, 4*Hp)
                full(packed["w_out"].shape),   # (Hp, Vp)
                full(packed["b_out"].shape),   # (1, Vp)
            ],
            out_specs=(
                full((T, Vp)),
                full((1, Hp)),
            ),
        ),
        compiler_params=pltpu.CompilerParams(dimension_semantics=("arbitrary",)),
    )(tokens.astype(jnp.int32), packed["emb"], h0,
      packed["w"], packed["b"], packed["w_out"], packed["b_out"])

    logp = logp_pad[:, :V]
    return logp, h_fin[:, :H].reshape(1, 1, H)


def decoder_forward(token, hidden, packed):
    """Single step == PyTorch Decoder.forward(input, hidden)."""
    tokens = jnp.asarray(token, jnp.int32).reshape(1)
    logp, h_new = gru_decode(tokens, hidden, packed)
    return logp[0:1], h_new


# -----------------------------------------------------------------------------
# Parameters (raw "torch-shaped" + packed/fused/padded kernel layout)
# -----------------------------------------------------------------------------
def init_params(key, hidden_size, output_size):
    """Synthetic params matching nn.Embedding / nn.GRU / nn.Linear shapes.
    Per-gate weights are stored pre-transposed (W^T), gate order r, z, n."""
    ks = jax.random.split(key, 7)
    s = 0.1
    H, V = hidden_size, output_size
    return {
        "emb":   s * jax.random.normal(ks[0], (V, H), jnp.float32),
        "w_ih":  s * jax.random.normal(ks[1], (3, H, H), jnp.float32),
        "w_hh":  s * jax.random.normal(ks[2], (3, H, H), jnp.float32),
        "b_ih":  s * jax.random.normal(ks[3], (3, H), jnp.float32),
        "b_hh":  s * jax.random.normal(ks[4], (3, H), jnp.float32),
        "w_out": s * jax.random.normal(ks[5], (H, V), jnp.float32),
        "b_out": s * jax.random.normal(ks[6], (V,), jnp.float32),
    }


def pack_params(raw, lane=128):
    """Fuse [x|h] gate weights to (2*Hp, 4*Hp) with 128-lane gate blocks,
    fold all biases into one (1, 4*Hp) vector, pad hidden/vocab axes."""
    H = raw["emb"].shape[1]
    V = raw["w_out"].shape[1]
    Hp = _round_up(H, lane)
    Vp = _round_up(V, lane)

    emb = jnp.zeros((Vp, Hp), jnp.float32).at[:V, :H].set(raw["emb"])

    # rows 0:H <- x path, rows Hp:Hp+H <- h path; lane blocks: r | z | gi_n | gh_n
    w = jnp.zeros((2 * Hp, 4 * Hp), jnp.float32)
    w = w.at[0:H,       0 * Hp:0 * Hp + H].set(raw["w_ih"][0])
    w = w.at[Hp:Hp + H, 0 * Hp:0 * Hp + H].set(raw["w_hh"][0])
    w = w.at[0:H,       1 * Hp:1 * Hp + H].set(raw["w_ih"][1])
    w = w.at[Hp:Hp + H, 1 * Hp:1 * Hp + H].set(raw["w_hh"][1])
    w = w.at[0:H,       2 * Hp:2 * Hp + H].set(raw["w_ih"][2])
    w = w.at[Hp:Hp + H, 3 * Hp:3 * Hp + H].set(raw["w_hh"][2])

    b = jnp.zeros((1, 4 * Hp), jnp.float32)
    b = b.at[0, 0 * Hp:0 * Hp + H].set(raw["b_ih"][0] + raw["b_hh"][0])
    b = b.at[0, 1 * Hp:1 * Hp + H].set(raw["b_ih"][1] + raw["b_hh"][1])
    b = b.at[0, 2 * Hp:2 * Hp + H].set(raw["b_ih"][2])
    b = b.at[0, 3 * Hp:3 * Hp + H].set(raw["b_hh"][2])      # b_hn: inside r*(.) by layout

    w_out = jnp.zeros((Hp, Vp), jnp.float32).at[:H, :V].set(raw["w_out"])
    b_out = jnp.full((1, Vp), -1e30, jnp.float32).at[0, :V].set(raw["b_out"])

    return {"emb": emb, "w": w, "b": b, "w_out": w_out, "b_out": b_out,
            "H": H, "Hp": Hp, "V": V, "Vp": Vp}


# -----------------------------------------------------------------------------
# Pure-JAX reference of the PyTorch forward (for correctness checks)
# -----------------------------------------------------------------------------
def reference_forward(token, hidden, raw):
    H = raw["emb"].shape[1]
    x = raw["emb"][token][None, :]
    h = hidden.reshape(1, H)
    gi = [x @ raw["w_ih"][g] + raw["b_ih"][g] for g in range(3)]
    gh = [h @ raw["w_hh"][g] + raw["b_hh"][g] for g in range(3)]
    r = jax.nn.sigmoid(gi[0] + gh[0])
    z = jax.nn.sigmoid(gi[1] + gh[1])
    n = jnp.tanh(gi[2] + r * gh[2])
    h_new = (1.0 - z) * n + z * h
    logits = h_new @ raw["w_out"] + raw["b_out"][None, :]
    logp = jax.nn.log_softmax(logits, axis=1)
    return logp, h_new.reshape(1, 1, H)


if __name__ == "__main__":
    hidden_size = 32
    output_size = 70   # synthetic stand-in for len(char_to_index)

    key = jax.random.PRNGKey(0)
    raw = init_params(key, hidden_size, output_size)
    packed = pack_params(raw)

    # --- single-step forward (exact module semantics) ------------------------
    token = jnp.int32(5)
    hidden = jnp.zeros((1, 1, hidden_size), jnp.float32)     # Decoder.initHidden()

    logp, new_hidden = decoder_forward(token, hidden, packed)
    jax.block_until_ready((logp, new_hidden))

    ref_logp, ref_hidden = reference_forward(5, hidden, raw)
    assert logp.shape == (1, output_size)
    assert new_hidden.shape == (1, 1, hidden_size)
    assert jnp.allclose(logp, ref_logp, atol=1e-5)
    assert jnp.allclose(new_hidden, ref_hidden, atol=1e-5)

    # --- whole teacher-forced decode (T steps) inside ONE pallas_call --------
    tokens = jnp.array([0, 5, 9, 2, 7, 33, 1, 4], jnp.int32)  # T = 8
    logp_seq, h_seq = gru_decode(tokens, hidden, packed)
    jax.block_until_ready((logp_seq, h_seq))

    h_ref = hidden
    ref_rows = []
    for t in range(tokens.shape[0]):
        lp, h_ref = reference_forward(int(tokens[t]), h_ref, raw)
        ref_rows.append(lp)
    ref_seq = jnp.concatenate(ref_rows, axis=0)

    assert logp_seq.shape == (int(tokens.shape[0]), output_size)
    assert jnp.allclose(logp_seq, ref_seq, atol=1e-5)
    assert jnp.allclose(h_seq, h_ref, atol=1e-5)

    print("KERNEL_OK")
</pallas_src>

<mosaic_0001>
module attributes {stable_mosaic.version = 11 : i64} {
  func.func @decoder_kernel(%arg0: i32, %arg1: memref<1xi32, #tpu.memory_space<smem>>, %arg2: memref<128x128xf32, #tpu.memory_space<vmem>>, %arg3: memref<1x128xf32, #tpu.memory_space<vmem>>, %arg4: memref<256x512xf32, #tpu.memory_space<vmem>>, %arg5: memref<1x512xf32, #tpu.memory_space<vmem>>, %arg6: memref<128x128xf32, #tpu.memory_space<vmem>>, %arg7: memref<1x128xf32, #tpu.memory_space<vmem>>, %arg8: memref<1x128xf32, #tpu.memory_space<vmem>>, %arg9: memref<1x128xf32, #tpu.memory_space<vmem>>) attributes {dimension_semantics = [#tpu.dimension_semantics<arbitrary>], iteration_bounds = array<i64: 1>, scalar_prefetch = 1 : i64, scratch_operands = 0 : i64, tpu.core_type = #tpu.core_type<tc>, window_params = [{pipeline_mode = #tpu.pipeline_mode<synchronous>, transform_indices = @transform_0, window_bounds = array<i64: 128, 128>}, {pipeline_mode = #tpu.pipeline_mode<synchronous>, transform_indices = @transform_1, window_bounds = array<i64: 1, 128>}, {pipeline_mode = #tpu.pipeline_mode<synchronous>, transform_indices = @transform_2, window_bounds = array<i64: 256, 512>}, {pipeline_mode = #tpu.pipeline_mode<synchronous>, transform_indices = @transform_3, window_bounds = array<i64: 1, 512>}, {pipeline_mode = #tpu.pipeline_mode<synchronous>, transform_indices = @transform_4, window_bounds = array<i64: 128, 128>}, {pipeline_mode = #tpu.pipeline_mode<synchronous>, transform_indices = @transform_5, window_bounds = array<i64: 1, 128>}, {pipeline_mode = #tpu.pipeline_mode<synchronous>, transform_indices = @transform_6, window_bounds = array<i64: 1, 128>}, {pipeline_mode = #tpu.pipeline_mode<synchronous>, transform_indices = @transform_7, window_bounds = array<i64: 1, 128>}]} {
    %c0 = arith.constant 0 : index
    %c0_0 = arith.constant 0 : index
    %0 = vector.load %arg3[%c0, %c0_0] : memref<1x128xf32, #tpu.memory_space<vmem>>, vector<1x128xf32>
    %c0_i32 = arith.constant 0 : i32
    %1 = arith.index_cast %c0_i32 : i32 to index
    %2 = memref.load %arg1[%1] : memref<1xi32, #tpu.memory_space<smem>>
    %c127_i32 = arith.constant 127 : i32
    %3 = arith.minsi %2, %c127_i32 : i32
    %4 = arith.index_cast %3 : i32 to index
    %c0_1 = arith.constant 0 : index
    %5 = vector.load %arg2[%4, %c0_1] : memref<128x128xf32, #tpu.memory_space<vmem>>, vector<1x128xf32>
    %6 = tpu.concatenate %5, %0 in 1 : vector<1x128xf32>, vector<1x128xf32> -> vector<1x256xf32>
    %c0_2 = arith.constant 0 : index
    %c0_3 = arith.constant 0 : index
    %7 = vector.load %arg4[%c0_2, %c0_3] : memref<256x512xf32, #tpu.memory_space<vmem>>, vector<256x512xf32>
    %cst = arith.constant dense<0.000000e+00> : vector<1x512xf32>
    %8 = tpu.matmul %6, %7, %cst {dimension_numbers = #tpu.dot_dimension_numbers<[1], [0], [0], [1], [0, 0, 1, 1], [], []>} : vector<1x256xf32>, vector<256x512xf32>, vector<1x512xf32> -> vector<1x512xf32>
    %c0_4 = arith.constant 0 : index
    %c0_5 = arith.constant 0 : index
    %9 = vector.load %arg5[%c0_4, %c0_5] : memref<1x512xf32, #tpu.memory_space<vmem>>, vector<1x512xf32>
    %10 = arith.addf %8, %9 : vector<1x512xf32>
    %11 = vector.extract_strided_slice %10 {offsets = [0, 0], sizes = [1, 128], strides = [1, 1]} : vector<1x512xf32> to vector<1x128xf32>
    %12 = arith.negf %11 : vector<1x128xf32>
    %13 = math.exp %12 : vector<1x128xf32>
    %cst_6 = arith.constant 1.000000e+00 : f32
    %14 = vector.broadcast %cst_6 : f32 to vector<1x128xf32>
    %15 = arith.addf %14, %13 : vector<1x128xf32>
    %16 = arith.divf %14, %15 : vector<1x128xf32>
    %17 = vector.extract_strided_slice %10 {offsets = [0, 128], sizes = [1, 128], strides = [1, 1]} : vector<1x512xf32> to vector<1x128xf32>
    %18 = arith.negf %17 : vector<1x128xf32>
    %19 = math.exp %18 : vector<1x128xf32>
    %cst_7 = arith.constant 1.000000e+00 : f32
    %20 = vector.broadcast %cst_7 : f32 to vector<1x128xf32>
    %21 = arith.addf %20, %19 : vector<1x128xf32>
    %22 = arith.divf %20, %21 : vector<1x128xf32>
    %23 = vector.extract_strided_slice %10 {offsets = [0, 256], sizes = [1, 128], strides = [1, 1]} : vector<1x512xf32> to vector<1x128xf32>
    %24 = vector.extract_strided_slice %10 {offsets = [0, 384], sizes = [1, 128], strides = [1, 1]} : vector<1x512xf32> to vector<1x128xf32>
    %25 = arith.mulf %16, %24 : vector<1x128xf32>
    %26 = arith.addf %23, %25 : vector<1x128xf32>
    %27 = math.tanh %26 : vector<1x128xf32>
    %cst_8 = arith.constant 1.000000e+00 : f32
    %28 = vector.broadcast %cst_8 : f32 to vector<1x128xf32>
    %29 = arith.subf %28, %22 : vector<1x128xf32>
    %30 = arith.mulf %29, %27 : vector<1x128xf32>
    %31 = arith.mulf %22, %0 : vector<1x128xf32>
    %32 = arith.addf %30, %31 : vector<1x128xf32>
    %c0_9 = arith.constant 0 : index
    %c0_10 = arith.constant 0 : index
    %33 = vector.load %arg6[%c0_9, %c0_10] : memref<128x128xf32, #tpu.memory_space<vmem>>, vector<128x128xf32>
    %cst_11 = arith.constant dense<0.000000e+00> : vector<1x128xf32>
    %34 = tpu.matmul %32, %33, %cst_11 {dimension_numbers = #tpu.dot_dimension_numbers<[1], [0], [0], [1], [0, 0, 1, 1], [], []>} : vector<1x128xf32>, vector<128x128xf32>, vector<1x128xf32> -> vector<1x128xf32>
    %c0_12 = arith.constant 0 : index
    %c0_13 = arith.constant 0 : index
    %35 = vector.load %arg7[%c0_12, %c0_13] : memref<1x128xf32, #tpu.memory_space<vmem>>, vector<1x128xf32>
    %36 = arith.addf %34, %35 : vector<1x128xf32>
    %cst_14 = arith.constant dense<0xFF800000> : vector<1xf32>
    %37 = vector.multi_reduction <maximumf>, %36, %cst_14 [1] : vector<1x128xf32> to vector<1xf32>
    %38 = vector.shape_cast %37 : vector<1xf32> to vector<1x1xf32>
    %39 = vector.broadcast %38 : vector<1x1xf32> to vector<1x128xf32>
    %40 = arith.subf %36, %39 : vector<1x128xf32>
    %41 = math.exp %40 : vector<1x128xf32>
    %cst_15 = arith.constant dense<0.000000e+00> : vector<1xf32>
    %42 = vector.multi_reduction <add>, %41, %cst_15 [1] : vector<1x128xf32> to vector<1xf32>
    %43 = vector.shape_cast %42 : vector<1xf32> to vector<1x1xf32>
    %44 = math.log %43 : vector<1x1xf32>
    %45 = vector.broadcast %44 : vector<1x1xf32> to vector<1x128xf32>
    %46 = arith.subf %40, %45 : vector<1x128xf32>
    %47 = arith.index_cast %c0_i32 : i32 to index
    %c0_16 = arith.constant 0 : index
    %48 = vector.load %arg8[%47, %c0_16] : memref<1x128xf32, #tpu.memory_space<vmem>>, vector<1x128xf32>
    tpu.vector_store %arg8[%47, %c0_16], %46 {strides = array<i32>} : memref<1x128xf32, #tpu.memory_space<vmem>>, vector<1x128xf32>,
    %c1_i32 = arith.constant 1 : i32
    %c0_17 = arith.constant 0 : index
    %c0_18 = arith.constant 0 : index
    %49 = vector.load %arg9[%c0_17, %c0_18] : memref<1x128xf32, #tpu.memory_space<vmem>>, vector<1x128xf32>
    tpu.vector_store %arg9[%c0_17, %c0_18], %32 {strides = array<i32>} : memref<1x128xf32, #tpu.memory_space<vmem>>, vector<1x128xf32>,
    return
  }
  func.func @transform_0(%arg0: i32, %arg1: memref<1xi32, #tpu.memory_space<smem>>) -> (i32, i32) {
    %c0_i32 = arith.constant 0 : i32
    %c0_i32_0 = arith.constant 0 : i32
    %c0_i32_1 = arith.constant 0 : i32
    return %c0_i32, %c0_i32_0 : i32, i32
  }
  func.func @transform_1(%arg0: i32, %arg1: memref<1xi32, #tpu.memory_space<smem>>) -> (i32, i32) {
    %c0_i32 = arith.constant 0 : i32
    %c0_i32_0 = arith.constant 0 : i32
    %c0_i32_1 = arith.constant 0 : i32
    return %c0_i32, %c0_i32_0 : i32, i32
  }
  func.func @transform_2(%arg0: i32, %arg1: memref<1xi32, #tpu.memory_space<smem>>) -> (i32, i32) {
    %c0_i32 = arith.constant 0 : i32
    %c0_i32_0 = arith.constant 0 : i32
    %c0_i32_1 = arith.constant 0 : i32
    return %c0_i32, %c0_i32_0 : i32, i32
  }
  func.func @transform_3(%arg0: i32, %arg1: memref<1xi32, #tpu.memory_space<smem>>) -> (i32, i32) {
    %c0_i32 = arith.constant 0 : i32
    %c0_i32_0 = arith.constant 0 : i32
    %c0_i32_1 = arith.constant 0 : i32
    return %c0_i32, %c0_i32_0 : i32, i32
  }
  func.func @transform_4(%arg0: i32, %arg1: memref<1xi32, #tpu.memory_space<smem>>) -> (i32, i32) {
    %c0_i32 = arith.constant 0 : i32
    %c0_i32_0 = arith.constant 0 : i32
    %c0_i32_1 = arith.constant 0 : i32
    return %c0_i32, %c0_i32_0 : i32, i32
  }
  func.func @transform_5(%arg0: i32, %arg1: memref<1xi32, #tpu.memory_space<smem>>) -> (i32, i32) {
    %c0_i32 = arith.constant 0 : i32
    %c0_i32_0 = arith.constant 0 : i32
    %c0_i32_1 = arith.constant 0 : i32
    return %c0_i32, %c0_i32_0 : i32, i32
  }
  func.func @transform_6(%arg0: i32, %arg1: memref<1xi32, #tpu.memory_space<smem>>) -> (i32, i32) {
    %c0_i32 = arith.constant 0 : i32
    %c0_i32_0 = arith.constant 0 : i32
    %c0_i32_1 = arith.constant 0 : i32
    return %c0_i32, %c0_i32_0 : i32, i32
  }
  func.func @transform_7(%arg0: i32, %arg1: memref<1xi32, #tpu.memory_space<smem>>) -> (i32, i32) {
    %c0_i32 = arith.constant 0 : i32
    %c0_i32_0 = arith.constant 0 : i32
    %c0_i32_1 = arith.constant 0 : i32
    return %c0_i32, %c0_i32_0 : i32, i32
  }
}

</mosaic_0001>

<bundles_post_ra>
// kernel: tpu_custom_call.1
= control target key start
LH: loop header
LB: loop body
LE: loop exit
PB: predicated region body
PF: predicated region fallthrough
CT: control target
= control target key end

     0   :  { %15 = vsyncpa [#allocation5], 0  ;;  %s1011_s0 = inlined_call_operand.<no memory space> [shape: s32[1], index: 0, kind: input, shape index: {}]   ;;  %s1012_s1 = inlined_call_operand.hbm [shape: f32[128,128], index: 1, kind: input, shape index: {}]   ;;  %s1013_s2 = inlined_call_operand.vmem [shape: f32[1,128], index: 2, kind: input, shape index: {}]   ;;  %s1014_s3 = inlined_call_operand.hbm [shape: f32[256,512], index: 3, kind: input, shape index: {}]   ;;  %s1015_s4 = inlined_call_operand.vmem [shape: f32[1,512], index: 4, kind: input, shape index: {}]   ;;  %s1016_s5 = inlined_call_operand.hbm [shape: f32[128,128], index: 5, kind: input, shape index: {}]   ;;  %s1017_s6 = inlined_call_operand.vmem [shape: f32[1,128], index: 6, kind: input, shape index: {}]   ;;  %s1018_s7 = inlined_call_operand.hbm [shape: f32[1,128], index: 7, kind: output, shape index: {0}]   ;;  %s1019_s8 = inlined_call_operand.hbm [shape: f32[1,128], index: 8, kind: output, shape index: {1}]  }
   0x1   :  { %16 = vsyncpa [#allocation8], 0 }
   0x2   :  { %17 = vsyncpa [#allocation6], 0 }
   0x3   :  { %18 = vsyncpa [#allocation12], 0  ;;  %s870_s27 = smov [#allocation7]   ;;  %s752_s9 = scalar_lea.hbm %s1014_s3, 16384 }
   0x4   :  { %s38_s28 = sshll.u32 %s870_s27, 4  ;;  %p753_p0 = scmp.ne.s32.totalorder %s1014_s3, %s752_s9  ;;  %s39_s28 = int_to_ptr.vmem [resolvable:$true] %s38_s28 }
   0x5   :  { %p756_p1 = scmp.lt.u32.totalorder %s752_s9, %s1014_s3 }
   0x7   :  { %p758_p2 = pnand %p756_p1, %p753_p0 }
   0x9   :  { %761 = shalt.err (!%p758_p2)
}
   0xa   :  { %s762_s14 = scalar_lea.vmem %s39_s28, 16384  ;;  %p767_p4 = scmp.lt.s32.totalorder %s39_s28, %s39_s28 }
   0xb   :  { %p763_p3 = scmp.ne.s32.totalorder %s39_s28, %s762_s14  ;;  %p768_p5 = scmp.lt.s32.totalorder %s762_s14, %s762_s14 }
   0xd   :  { %p769_p6 = por %p768_p5, %p767_p4 }
   0xf   :  { %p770_p7 = pnand %p769_p6, %p763_p3 }
  0x11   :  { %773 = shalt.err (!%p770_p7)
}
  0x12   :  { %s871_s15 = smov 512   ;;  %s872_s16 = smov 32  }
  0x13   :  { %44 = dma.hbm_to_vmem [thread:$0]  %s1014_s3, 16384, %s39_s28, [#allocation8], %s871_s15, %s871_s15, %s872_s16  }
  0x14   :  { %s873_s19 = smov [#allocation4]   ;;  %s774_s23 = scalar_lea.hbm %s1012_s1, 2048 }
  0x15   :  { %s24_s20 = sshll.u32 %s873_s19, 4  ;;  %p775_p8 = scmp.ne.s32.totalorder %s1012_s1, %s774_s23  ;;  %s25_s20 = int_to_ptr.vmem [resolvable:$true] %s24_s20 }
  0x16   :  { %p778_p9 = scmp.lt.u32.totalorder %s774_s23, %s1012_s1 }
  0x18   :  { %p780_p10 = pnand %p778_p9, %p775_p8 }
  0x1a   :  { %783 = shalt.err (!%p780_p10)
}
  0x1b   :  { %s784_s29 = scalar_lea.vmem %s25_s20, 2048  ;;  %p789_p12 = scmp.lt.s32.totalorder %s25_s20, %s25_s20 }
  0x1c   :  { %p785_p11 = scmp.ne.s32.totalorder %s25_s20, %s784_s29  ;;  %p790_p13 = scmp.lt.s32.totalorder %s784_s29, %s784_s29 }
  0x1e   :  { %p791_p0 = por %p790_p13, %p789_p12 }
  0x20   :  { %p792_p1 = pnand %p791_p0, %p785_p11 }
  0x22   :  { %795 = shalt.err (!%p792_p1)
}
  0x23   :  { %s874_s3 = smov 128   ;;  %s875_s28 = smov 8  }
  0x24   :  { %30 = dma.hbm_to_vmem [thread:$0]  %s1012_s1, 2048, %s25_s20, [#allocation5], %s874_s3, %s874_s3, %s875_s28  }
  0x25   :  { %s876_s10 = smov [#allocation9]   ;;  %s796_s14 = scalar_lea.hbm %s1016_s5, 2048 }
  0x26   :  { %s52_s11 = sshll.u32 %s876_s10, 4  ;;  %p797_p2 = scmp.ne.s32.totalorder %s1016_s5, %s796_s14  ;;  %s53_s11 = int_to_ptr.vmem [resolvable:$true] %s52_s11 }
  0x27   :  { %p800_p3 = scmp.lt.u32.totalorder %s796_s14, %s1016_s5 }
  0x29   :  { %p802_p4 = pnand %p800_p3, %p797_p2 }
  0x2b   :  { %805 = shalt.err (!%p802_p4)
}
  0x2c   :  { %s806_s19 = scalar_lea.vmem %s53_s11, 2048  ;;  %p811_p6 = scmp.lt.s32.totalorder %s53_s11, %s53_s11 }
  0x2d   :  { %p807_p5 = scmp.ne.s32.totalorder %s53_s11, %s806_s19  ;;  %p812_p7 = scmp.lt.s32.totalorder %s806_s19, %s806_s19 }
  0x2f   :  { %p813_p8 = por %p812_p7, %p811_p6 }
  0x31   :  { %p814_p9 = pnand %p813_p8, %p807_p5 }
  0x33   :  { %817 = shalt.err (!%p814_p9)
}
  0x34   :  { %58 = dma.hbm_to_vmem [thread:$0]  %s1016_s5, 2048, %s53_s11, [#allocation8], %s874_s3, %s874_s3, %s875_s28  }
  0x35   :  { %862 = dma.done.wait [#allocation5], 2048  }
  0x36   :  { %863 = vsyncadd [#allocation5], 4294965248 }
  0x37   :  { %864 = dma.done.wait [#allocation8], 18432  }
  0x38   :  { %865 = vsyncadd [#allocation8], 4294948864  ;;  %v77_v0 = vld [vmem:[#allocation7 + $0x8] sm:$0xff]  ;;  %v76_v2 = vld [vmem:[#allocation7] sm:$0xff]  ;;  %p72_p10 = scmp.lt.s32.totalorder %s1011_s0, 127  ;;  %vm878_vm0 = vmmov 0  }
  0x39   :  { %v81_v1 = vld [vmem:[#allocation7 + $0x28] sm:$0xff]  ;;  %v80_v4 = vld [vmem:[#allocation7 + $0x20] sm:$0xff]  ;;  %v79_v21 = vld [vmem:[#allocation7 + $0x18] sm:$0xff]  ;;  %vm474_vm1 = vcmask 1040384   ;;  %s880_s28 = smov [#allocation11]  }
  0x3a   :  { %v574_v3 = vpack.c.bf16 %v81_v1, %v77_v0  ;;  %v85_v5 = vld [vmem:[#allocation7 + $0x48] sm:$0xff]  ;;  %v576_v7 = vpack.c.bf16 %v80_v4, %v76_v2  ;;  %v84_v9 = vld [vmem:[#allocation7 + $0x40] sm:$0xff]  ;;  %v83_v25 = vld [vmem:[#allocation7 + $0x38] sm:$0xff]  ;;  %s1021_s0 = smov (!%p72_p10, %s1011_s0), 127  ;;  %s505_s30 = sshll.u32 %s880_s28, 4  ;;  %s506_s30 = int_to_ptr.vmem [resolvable:$true] %s505_s30 }
  0x3b   :  { %v89_v6 = vld [vmem:[#allocation7 + $0x68] sm:$0xff]  ;;  %v88_v10 = vld [vmem:[#allocation7 + $0x60] sm:$0xff]  ;;  %v638_v27 = vpack.c.bf16 %v83_v25, %v79_v21  ;;  %v78_v28 = vld [vmem:[#allocation7 + $0x10] sm:$0xff]  ;;  %s74_s27 = scalar_lea.vmem [#allocation4], %s1021_s0  ;;  %s818_s9 = scalar_lea.vmem %s506_s30, 16 }
  0x3c   :  { %v578_v8 = vpack.c.bf16 %v89_v6, %v85_v5  ;;  %v93_v11 = vld [vmem:[#allocation7 + $0x88] sm:$0xff]  ;;  %575 = vmatprep.subr.bf16.mxu0 %v574_v3  ;;  %v580_v13 = vpack.c.bf16 %v88_v10, %v84_v9  ;;  %v92_v15 = vld [vmem:[#allocation7 + $0x80] sm:$0xff]  ;;  %v82_v29 = vld [vmem:[#allocation7 + $0x30] sm:$0xff]  ;;  %p819_p11 = scmp.ne.s32.totalorder %s506_s30, %s818_s9  ;;  %s822_s10 = scalar_lea.vmem %s506_s30, 32 }
  0x3d   :  { %v97_v12 = vld [vmem:[#allocation7 + $0xa8] sm:$0xff]  ;;  %577 = vmatpush1.bf16.msra.mxu0 %v576_v7  ;;  %v96_v16 = vld [vmem:[#allocation7 + $0xa0] sm:$0xff]  ;;  %v640_v30 = vpack.c.bf16 %v82_v29, %v78_v28  ;;  %v87_v31 = vld [vmem:[#allocation7 + $0x58] sm:$0xff]  ;;  %639 = vmatprep.subr.bf16.mxu1 %v638_v27  ;;  %p823_p12 = scmp.lt.s32.totalorder %s506_s30, %s506_s30  ;;  %p824_p13 = scmp.lt.s32.totalorder %s822_s10, %s818_s9 }
  0x3e   :  { %579 = vmatprep.subr.bf16.mxu0 %v578_v8  ;;  %v582_v14 = vpack.c.bf16 %v97_v12, %v93_v11  ;;  %v101_v17 = vld [vmem:[#allocation7 + $0xc8] sm:$0xff]  ;;  %v584_v19 = vpack.c.bf16 %v96_v16, %v92_v15  ;;  %v100_v20 = vld [vmem:[#allocation7 + $0xc0] sm:$0xff]  ;;  %v91_v32 = vld [vmem:[#allocation7 + $0x78] sm:$0xff] }
  0x3f   :  { %v105_v18 = vld [vmem:[#allocation7 + $0xe8] sm:$0xff]  ;;  %v104_v23 = vld [vmem:[#allocation7 + $0xe0] sm:$0xff]  ;;  %v642_v35 = vpack.c.bf16 %v91_v32, %v87_v31  ;;  %v86_v36 = vld [vmem:[#allocation7 + $0x50] sm:$0xff]  ;;  %641 = vmatpush1.bf16.msra.mxu1 %v640_v30  ;;  %p825_p0 = por %p824_p13, %p823_p12 }
  0x40   :  { %v586_v22 = vpack.c.bf16 %v105_v18, %v101_v17  ;;  %v109_v24 = vld [vmem:[#allocation7 + $0x108] sm:$0xff]  ;;  %v588_v33 = vpack.c.bf16 %v104_v23, %v100_v20  ;;  %v108_v34 = vld [vmem:[#allocation7 + $0x100] sm:$0xff]  ;;  %v90_v40 = vld [vmem:[#allocation7 + $0x70] sm:$0xff] }
  0x41   :  { %581 = vmatpush1.bf16.msra.mxu0 %v580_v13  ;;  %v113_v26 = vld [vmem:[#allocation7 + $0x128] sm:$0xff]  ;;  %v112_v38 = vld [vmem:[#allocation7 + $0x120] sm:$0xff]  ;;  %643 = vmatprep.subr.bf16.mxu1 %v642_v35  ;;  %v644_v42 = vpack.c.bf16 %v90_v40, %v86_v36  ;;  %v95_v43 = vld [vmem:[#allocation7 + $0x98] sm:$0xff]  ;;  %p826_p1 = pnand %p825_p0, %p819_p11 }
  0x42   :  { %583 = vmatprep.subr.bf16.mxu0 %v582_v14  ;;  %v590_v37 = vpack.c.bf16 %v113_v26, %v109_v24  ;;  %v117_v39 = vld [vmem:[#allocation7 + $0x148] sm:$0xff]  ;;  %v99_v44 = vld [vmem:[#allocation7 + $0xb8] sm:$0xff]  ;;  %v94_v46 = vld [vmem:[#allocation7 + $0x90] sm:$0xff]  ;;  %v592_v48 = vpack.c.bf16 %v112_v38, %v108_v34 }
  0x43   :  { %v121_v41 = vld [vmem:[#allocation7 + $0x168] sm:$0xff]  ;;  %v646_v45 = vpack.c.bf16 %v99_v44, %v95_v43  ;;  %v98_v47 = vld [vmem:[#allocation7 + $0xb0] sm:$0xff]  ;;  %v116_v49 = vld [vmem:[#allocation7 + $0x140] sm:$0xff]  ;;  %645 = vmatpush1.bf16.msra.mxu1 %v644_v42 }
  0x44   :  { %v103_v50 = vld [vmem:[#allocation7 + $0xd8] sm:$0xff]  ;;  %v594_v51 = vpack.c.bf16 %v121_v41, %v117_v39  ;;  %v120_v52 = vld [vmem:[#allocation7 + $0x160] sm:$0xff]  ;;  %v125_v53 = vld [vmem:[#allocation7 + $0x188] sm:$0xff]  ;;  %v648_v54 = vpack.c.bf16 %v98_v47, %v94_v46 }
  0x45   :  { %585 = vmatpush1.bf16.msra.mxu0 %v584_v19  ;;  %v107_v55 = vld [vmem:[#allocation7 + $0xf8] sm:$0xff]  ;;  %v129_v56 = vld [vmem:[#allocation7 + $0x1a8] sm:$0xff]  ;;  %647 = vmatprep.subr.bf16.mxu1 %v646_v45  ;;  %v102_v58 = vld [vmem:[#allocation7 + $0xd0] sm:$0xff]  ;;  %v596_v62 = vpack.c.bf16 %v120_v52, %v116_v49 }
  0x46   :  { %587 = vmatprep.subr.bf16.mxu0 %v586_v22  ;;  %v650_v57 = vpack.c.bf16 %v107_v55, %v103_v50  ;;  %v106_v59 = vld [vmem:[#allocation7 + $0xf0] sm:$0xff]  ;;  %v111_v60 = vld [vmem:[#allocation7 + $0x118] sm:$0xff]  ;;  %v598_v63 = vpack.c.bf16 %v129_v56, %v125_v53  ;;  %v124_v0 = vld [vmem:[#allocation7 + $0x180] sm:$0xff] }
  0x47   :  { %v115_v61 = vld [vmem:[#allocation7 + $0x138] sm:$0xff]  ;;  %v128_v1 = vld [vmem:[#allocation7 + $0x1a0] sm:$0xff]  ;;  %v133_v2 = vld [vmem:[#allocation7 + $0x1c8] sm:$0xff]  ;;  %649 = vmatpush1.bf16.msra.mxu1 %v648_v54  ;;  %v652_v3 = vpack.c.bf16 %v106_v59, %v102_v58 }
  0x48   :  { %v137_v4 = vld [vmem:[#allocation7 + $0x1e8] sm:$0xff]  ;;  %651 = vmatprep.subr.bf16.mxu1 %v650_v57  ;;  %v654_v5 = vpack.c.bf16 %v115_v61, %v111_v60  ;;  %v110_v6 = vld [vmem:[#allocation7 + $0x110] sm:$0xff]  ;;  %v119_v8 = vld [vmem:[#allocation7 + $0x158] sm:$0xff]  ;;  %v600_v10 = vpack.c.bf16 %v128_v1, %v124_v0 }
  0x49   :  { %589 = vmatpush1.bf16.msra.mxu0 %v588_v33  ;;  %v114_v7 = vld [vmem:[#allocation7 + $0x130] sm:$0xff]  ;;  %v123_v9 = vld [vmem:[#allocation7 + $0x178] sm:$0xff]  ;;  %v602_v11 = vpack.c.bf16 %v137_v4, %v133_v2  ;;  %v132_v12 = vld [vmem:[#allocation7 + $0x1c0] sm:$0xff] }
  0x4a   :  { %591 = vmatprep.subr.bf16.mxu0 %v590_v37  ;;  %v136_v13 = vld [vmem:[#allocation7 + $0x1e0] sm:$0xff]  ;;  %v141_v14 = vld [vmem:[#allocation7 + $0x208] sm:$0xff]  ;;  %v656_v15 = vpack.c.bf16 %v114_v7, %v110_v6  ;;  %v658_v17 = vpack.c.bf16 %v123_v9, %v119_v8  ;;  %v118_v18 = vld [vmem:[#allocation7 + $0x150] sm:$0xff] }
  0x4b   :  { %653 = vmatpush1.bf16.msra.mxu1 %v652_v3  ;;  %v145_v16 = vld [vmem:[#allocation7 + $0x228] sm:$0xff]  ;;  %v122_v19 = vld [vmem:[#allocation7 + $0x170] sm:$0xff]  ;;  %v127_v20 = vld [vmem:[#allocation7 + $0x198] sm:$0xff]  ;;  %v604_v22 = vpack.c.bf16 %v136_v13, %v132_v12 }
  0x4c   :  { %655 = vmatprep.subr.bf16.mxu1 %v654_v5  ;;  %v131_v21 = vld [vmem:[#allocation7 + $0x1b8] sm:$0xff]  ;;  %v606_v23 = vpack.c.bf16 %v145_v16, %v141_v14  ;;  %v140_v24 = vld [vmem:[#allocation7 + $0x200] sm:$0xff]  ;;  %v149_v26 = vld [vmem:[#allocation7 + $0x248] sm:$0xff]  ;;  %v660_v27 = vpack.c.bf16 %v122_v19, %v118_v18 }
  0x4d   :  { %593 = vmatpush1.bf16.msra.mxu0 %v592_v48  ;;  %v144_v25 = vld [vmem:[#allocation7 + $0x220] sm:$0xff]  ;;  %v153_v28 = vld [vmem:[#allocation7 + $0x268] sm:$0xff]  ;;  %v662_v29 = vpack.c.bf16 %v131_v21, %v127_v20  ;;  %v126_v30 = vld [vmem:[#allocation7 + $0x190] sm:$0xff] }
  0x4e   :  { %595 = vmatprep.subr.bf16.mxu0 %v594_v51  ;;  %v130_v31 = vld [vmem:[#allocation7 + $0x1b0] sm:$0xff]  ;;  %v135_v32 = vld [vmem:[#allocation7 + $0x1d8] sm:$0xff]  ;;  %v608_v34 = vpack.c.bf16 %v144_v25, %v140_v24  ;;  %v148_v35 = vld [vmem:[#allocation7 + $0x240] sm:$0xff]  ;;  %v610_v36 = vpack.c.bf16 %v153_v28, %v149_v26 }
  0x4f   :  { %657 = vmatpush1.bf16.msra.mxu1 %v656_v15  ;;  %v139_v33 = vld [vmem:[#allocation7 + $0x1f8] sm:$0xff]  ;;  %v152_v37 = vld [vmem:[#allocation7 + $0x260] sm:$0xff]  ;;  %v157_v38 = vld [vmem:[#allocation7 + $0x288] sm:$0xff]  ;;  %v664_v40 = vpack.c.bf16 %v130_v31, %v126_v30 }
  0x50   :  { %659 = vmatprep.subr.bf16.mxu1 %v658_v17  ;;  %v161_v39 = vld [vmem:[#allocation7 + $0x2a8] sm:$0xff]  ;;  %v666_v41 = vpack.c.bf16 %v139_v33, %v135_v32  ;;  %v134_v42 = vld [vmem:[#allocation7 + $0x1d0] sm:$0xff]  ;;  %v966_v44 = vld [vmem:[%s1013_s2] sm:$0x1]  ;;  %v612_v47 = vpack.c.bf16 %v152_v37, %v148_v35 }
  0x51   :  { %597 = vmatpush1.bf16.msra.mxu0 %v596_v62  ;;  %v138_v43 = vld [vmem:[#allocation7 + $0x1f0] sm:$0xff]  ;;  %v143_v45 = vld [vmem:[#allocation7 + $0x218] sm:$0xff]  ;;  %290 = vmatprep.mubr.f32.mxu0 %v966_v44  ;;  %v614_v48 = vpack.c.bf16 %v161_v39, %v157_v38  ;;  %v156_v49 = vld [vmem:[#allocation7 + $0x280] sm:$0xff] }
  0x52   :  { %599 = vmatprep.subr.bf16.mxu0 %v598_v63  ;;  %v147_v46 = vld [vmem:[#allocation7 + $0x238] sm:$0xff]  ;;  %361 = vmatprep.mubr.f32.mxu1 %v966_v44  ;;  %v160_v50 = vld [vmem:[#allocation7 + $0x2a0] sm:$0xff]  ;;  %v165_v51 = vld [vmem:[#allocation7 + $0x2c8] sm:$0xff]  ;;  %v668_v52 = vpack.c.bf16 %v138_v43, %v134_v42 }
  0x53   :  { %661 = vmatpush1.bf16.msra.mxu1 %v660_v27  ;;  %v169_v53 = vld [vmem:[#allocation7 + $0x2e8] sm:$0xff]  ;;  %v670_v54 = vpack.c.bf16 %v147_v46, %v143_v45  ;;  %v142_v55 = vld [vmem:[#allocation7 + $0x210] sm:$0xff]  ;;  %v151_v57 = vld [vmem:[#allocation7 + $0x258] sm:$0xff]  ;;  %v616_v59 = vpack.c.bf16 %v160_v50, %v156_v49 }
  0x54   :  { %663 = vmatprep.subr.bf16.mxu1 %v662_v29  ;;  %v146_v56 = vld [vmem:[#allocation7 + $0x230] sm:$0xff]  ;;  %v155_v58 = vld [vmem:[#allocation7 + $0x278] sm:$0xff]  ;;  %v618_v60 = vpack.c.bf16 %v169_v53, %v165_v51  ;;  %v164_v61 = vld [vmem:[#allocation7 + $0x2c0] sm:$0xff] }
  0x55   :  { %601 = vmatpush1.bf16.msra.mxu0 %v600_v10  ;;  %v168_v62 = vld [vmem:[#allocation7 + $0x2e0] sm:$0xff]  ;;  %v173_v63 = vld [vmem:[#allocation7 + $0x308] sm:$0xff]  ;;  %v672_v0 = vpack.c.bf16 %v146_v56, %v142_v55  ;;  %v674_v2 = vpack.c.bf16 %v155_v58, %v151_v57  ;;  %v150_v3 = vld [vmem:[#allocation7 + $0x250] sm:$0xff] }
  0x56   :  { %603 = vmatprep.subr.bf16.mxu0 %v602_v11  ;;  %v177_v1 = vld [vmem:[#allocation7 + $0x328] sm:$0xff]  ;;  %v154_v4 = vld [vmem:[#allocation7 + $0x270] sm:$0xff]  ;;  %v159_v5 = vld [vmem:[#allocation7 + $0x298] sm:$0xff]  ;;  %v620_v7 = vpack.c.bf16 %v168_v62, %v164_v61 }
  0x57   :  { %665 = vmatpush1.bf16.msra.mxu1 %v664_v40  ;;  %v163_v6 = vld [vmem:[#allocation7 + $0x2b8] sm:$0xff]  ;;  %v622_v8 = vpack.c.bf16 %v177_v1, %v173_v63  ;;  %v172_v9 = vld [vmem:[#allocation7 + $0x300] sm:$0xff]  ;;  %v181_v11 = vld [vmem:[#allocation7 + $0x348] sm:$0xff]  ;;  %v676_v12 = vpack.c.bf16 %v154_v4, %v150_v3 }
  0x58   :  { %667 = vmatprep.subr.bf16.mxu1 %v666_v41  ;;  %v176_v10 = vld [vmem:[#allocation7 + $0x320] sm:$0xff]  ;;  %v185_v13 = vld [vmem:[#allocation7 + $0x368] sm:$0xff]  ;;  %v678_v14 = vpack.c.bf16 %v163_v6, %v159_v5  ;;  %v158_v15 = vld [vmem:[#allocation7 + $0x290] sm:$0xff]  ;;  %v877_v6 = vmov 0.0|0.0  }
  0x59   :  { %605 = vmatpush1.bf16.msra.mxu0 %v604_v22  ;;  %v162_v16 = vld [vmem:[#allocation7 + $0x2b0] sm:$0xff]  ;;  %v167_v17 = vld [vmem:[#allocation7 + $0x2d8] sm:$0xff]  ;;  %v624_v19 = vpack.c.bf16 %v176_v10, %v172_v9  ;;  %v626_v20 = vpack.c.bf16 %v185_v13, %v181_v11  ;;  %v180_v21 = vld [vmem:[#allocation7 + $0x340] sm:$0xff] }
  0x5a   :  { %607 = vmatprep.subr.bf16.mxu0 %v606_v23  ;;  %v171_v18 = vld [vmem:[#allocation7 + $0x2f8] sm:$0xff]  ;;  %v184_v22 = vld [vmem:[#allocation7 + $0x360] sm:$0xff]  ;;  %v189_v23 = vld [vmem:[#allocation7 + $0x388] sm:$0xff]  ;;  %v680_v24 = vpack.c.bf16 %v162_v16, %v158_v15 }
  0x5b   :  { %669 = vmatpush1.bf16.msra.mxu1 %v668_v52  ;;  %v193_v25 = vld [vmem:[#allocation7 + $0x3a8] sm:$0xff]  ;;  %v682_v26 = vpack.c.bf16 %v171_v18, %v167_v17  ;;  %v166_v27 = vld [vmem:[#allocation7 + $0x2d0] sm:$0xff]  ;;  %v175_v29 = vld [vmem:[#allocation7 + $0x318] sm:$0xff]  ;;  %v628_v31 = vpack.c.bf16 %v184_v22, %v180_v21 }
  0x5c   :  { %671 = vmatprep.subr.bf16.mxu1 %v670_v54  ;;  %v170_v28 = vld [vmem:[#allocation7 + $0x2f0] sm:$0xff]  ;;  %v179_v30 = vld [vmem:[#allocation7 + $0x338] sm:$0xff]  ;;  %v630_v32 = vpack.c.bf16 %v193_v25, %v189_v23  ;;  %v188_v33 = vld [vmem:[#allocation7 + $0x380] sm:$0xff] }
  0x5d   :  { %609 = vmatpush1.bf16.msra.mxu0 %v608_v34  ;;  %v192_v34 = vld [vmem:[#allocation7 + $0x3a0] sm:$0xff]  ;;  %v197_v35 = vld [vmem:[#allocation7 + $0x3c8] sm:$0xff]  ;;  %v686_v38 = vpack.c.bf16 %v179_v30, %v175_v29  ;;  %v174_v39 = vld [vmem:[#allocation7 + $0x310] sm:$0xff]  ;;  %v206_v29 = vlaneseq }
  0x5e   :  { %611 = vmatprep.subr.bf16.mxu0 %v610_v36  ;;  %v684_v36 = vpack.c.bf16 %v170_v28, %v166_v27  ;;  %v201_v37 = vld [vmem:[#allocation7 + $0x3e8] sm:$0xff]  ;;  %v178_v40 = vld [vmem:[#allocation7 + $0x330] sm:$0xff]  ;;  %v183_v41 = vld [vmem:[#allocation7 + $0x358] sm:$0xff]  ;;  %v632_v43 = vpack.c.bf16 %v192_v34, %v188_v33 }
  0x5f   :  { %673 = vmatpush1.bf16.msra.mxu1 %v672_v0  ;;  %v187_v42 = vld [vmem:[#allocation7 + $0x378] sm:$0xff]  ;;  %v634_v45 = vpack.c.bf16 %v201_v37, %v197_v35  ;;  %v196_v46 = vld [vmem:[#allocation7 + $0x3c0] sm:$0xff]  ;;  %v182_v50 = vld [vmem:[#allocation7 + $0x350] sm:$0xff]  ;;  %v207_v30 = vshrl.u32 %v206_v29, 7 }
  0x60   :  { %675 = vmatprep.subr.bf16.mxu1 %v674_v2  ;;  %v690_v49 = vpack.c.bf16 %v187_v42, %v183_v41  ;;  %v186_v51 = vld [vmem:[#allocation7 + $0x370] sm:$0xff]  ;;  %v191_v52 = vld [vmem:[#allocation7 + $0x398] sm:$0xff]  ;;  %v75_v61 = vld [vmem:[%s74_s27] sm:$0x1] }
  0x61   :  { %613 = vmatpush1.bf16.msra.mxu0 %v612_v47  ;;  %v200_v47 = vld [vmem:[#allocation7 + $0x3e0] sm:$0xff]  ;;  %v195_v53 = vld [vmem:[#allocation7 + $0x3b8] sm:$0xff]  ;;  %v692_v55 = vpack.c.bf16 %v186_v51, %v182_v50  ;;  %v190_v57 = vld [vmem:[#allocation7 + $0x390] sm:$0xff]  ;;  %v212_v33 = vsub.s32 1, %v207_v30 }
  0x62   :  { %615 = vmatprep.subr.bf16.mxu0 %v614_v48  ;;  %v688_v48 = vpack.c.bf16 %v178_v40, %v174_v39  ;;  %v636_v54 = vpack.c.bf16 %v200_v47, %v196_v46  ;;  %v694_v56 = vpack.c.bf16 %v195_v53, %v191_v52  ;;  %v194_v58 = vld [vmem:[#allocation7 + $0x3b0] sm:$0xff]  ;;  %v387_v3 = vld [vmem:[#allocation9] sm:$0xff]  ;;  %v388_v4 = vld [vmem:[#allocation9 + $0x8] sm:$0xff]  ;;  %v220_v47 = vsub.s32 3, %v207_v30 }
  0x63   :  { %677 = vmatpush1.bf16.msra.mxu1 %v676_v12  ;;  %v696_v62 = vpack.c.bf16 %v194_v58, %v190_v57  ;;  %v198_v0 = vld [vmem:[#allocation7 + $0x3d0] sm:$0xff]  ;;  %v703_v5 = vpack.c.bf16 %v388_v4, %v387_v3  ;;  %v391_v10 = vld [vmem:[#allocation9 + $0x20] sm:$0xff]  ;;  %v392_v11 = vld [vmem:[#allocation9 + $0x28] sm:$0xff] }
  0x64   :  { %679 = vmatprep.subr.bf16.mxu1 %v678_v14  ;;  %v202_v1 = vld [vmem:[#allocation7 + $0x3f0] sm:$0xff]  ;;  %v709_v12 = vpack.c.bf16 %v392_v11, %v391_v10  ;;  %v394_v14 = vld [vmem:[#allocation9 + $0x38] sm:$0xff]  ;;  %v395_v16 = vld [vmem:[#allocation9 + $0x40] sm:$0xff] }
  0x65   :  { %617 = vmatpush1.bf16.msra.mxu0 %v616_v59  ;;  %v199_v59 = vld [vmem:[#allocation7 + $0x3d8] sm:$0xff]  ;;  %v700_v2 = vpack.c.bf16 %v202_v1, %v198_v0  ;;  %v393_v13 = vld [vmem:[#allocation9 + $0x30] sm:$0xff]  ;;  %v396_v17 = vld [vmem:[#allocation9 + $0x48] sm:$0xff] }
  0x66   :  { %619 = vmatprep.subr.bf16.mxu0 %v618_v60  ;;  %v203_v60 = vld [vmem:[#allocation7 + $0x3f8] sm:$0xff]  ;;  %v712_v15 = vpack.c.bf16 %v394_v14, %v393_v13  ;;  %v715_v18 = vpack.c.bf16 %v396_v17, %v395_v16  ;;  %v399_v22 = vld [vmem:[#allocation9 + $0x60] sm:$0xff]  ;;  %v400_v23 = vld [vmem:[#allocation9 + $0x68] sm:$0xff] }
  0x67   :  { %681 = vmatpush1.bf16.msra.mxu1 %v680_v24  ;;  %v698_v63 = vpack.c.bf16 %v203_v60, %v199_v59  ;;  %v879_v24 = vmov 0.0   ;;  %v721_v25 = vpack.c.bf16 %v400_v23, %v399_v22  ;;  %v402_v27 = vld [vmem:[#allocation9 + $0x78] sm:$0xff]  ;;  %v403_v0 = vld [vmem:[%s1017_s6] sm:$0x1] }
  0x68   :  { %683 = vmatprep.subr.bf16.mxu1 %v682_v26  ;;  %v401_v26 = vld [vmem:[#allocation9 + $0x70] sm:$0xff] }
  0x69   :  { %621 = vmatpush1.bf16.msra.mxu0 %v620_v7  ;;  %v389_v7 = vld [vmem:[#allocation9 + $0x10] sm:$0xff]  ;;  %v724_v28 = vpack.c.bf16 %v402_v27, %v401_v26 }
  0x6a   :  { %623 = vmatprep.subr.bf16.mxu0 %v622_v8  ;;  %v390_v8 = vld [vmem:[#allocation9 + $0x18] sm:$0xff] }
  0x6b   :  { %685 = vmatpush1.bf16.msra.mxu1 %v684_v36  ;;  %v706_v9 = vpack.c.bf16 %v390_v8, %v389_v7 }
  0x6c   :  { %687 = vmatprep.subr.bf16.mxu1 %v686_v38 }
  0x6d   :  { %625 = vmatpush1.bf16.msra.mxu0 %v624_v19  ;;  %v397_v19 = vld [vmem:[#allocation9 + $0x50] sm:$0xff] }
  0x6e   :  { %627 = vmatprep.subr.bf16.mxu0 %v626_v20  ;;  %v398_v20 = vld [vmem:[#allocation9 + $0x58] sm:$0xff] }
  0x6f   :  { %689 = vmatpush1.bf16.msra.mxu1 %v688_v48  ;;  %v718_v21 = vpack.c.bf16 %v398_v20, %v397_v19  ;;  %v216_v48 = vsub.s32 2, %v207_v30 }
  0x70   :  { %691 = vmatprep.subr.bf16.mxu1 %v690_v49 }
  0x71   :  { %629 = vmatpush1.bf16.msra.mxu0 %v628_v31  ;;  %v208_v31 = vsub.s32 0, %v207_v30 }
  0x72   :  { %631 = vmatprep.subr.bf16.mxu0 %v630_v32  ;;  %v204_v32 = vld [vmem:[%s1015_s4] sm:$0xf] }
  0x73   :  { %693 = vmatpush1.bf16.msra.mxu1 %v692_v55  ;;  %v209_v34 = vrot.slane %v204_v32, %v208_v31  ;;  %v213_v36 = vrot.slane %v204_v32, %v212_v33  ;;  %v221_v49 = vrot.slane %v204_v32, %v220_v47  ;;  %v217_v52 = vrot.slane %v204_v32, %v216_v48 }
  0x74   :  { %695 = vmatprep.subr.bf16.mxu1 %v694_v56 }
  0x75   :  { %633 = vmatpush1.bf16.msra.mxu0 %v632_v43 }
  0x76   :  { %635 = vmatprep.subr.bf16.mxu0 %v634_v45 }
  0x77   :  { %697 = vmatpush1.bf16.msra.mxu1 %v696_v62 }
  0x78   :  { %699 = vmatprep.subr.bf16.mxu1 %v698_v63 }
  0x79   :  { %637 = vmatpush1.bf16.msra.mxu0 %v636_v54 }
  0x7a   :  { %702 = vmatprep.subr.bf16.mxu0 %v877_v6 }
  0x7b   :  { %701 = vmatpush1.bf16.msra.mxu1 %v700_v2 }
  0x7c   :  { %291 = vmatmul.mubr.f32.vlgmr.msra.gmra.mrb[0].mxu0 %v75_v61 }
  0x7d   :  { %704 = vmatpush3.bf16.msra.mxu0 %v703_v5  ;;  %571 = vmatprep.mubr.msk.f32.mxu0 %vm878_vm0, %v879_v24 }
  0x7e   :  { %362 = vmatmul.mubr.f32.vlgmr.msra.gmra.mrb[0].mxu1 %v75_v61  ;;  %705 = vmatprep.subr.bf16.mxu0 %v877_v6 }
  0x81   :  { %707 = vmatpush3.bf16.msra.mxu0 %v706_v9 }
  0x82   :  { %708 = vmatprep.subr.bf16.mxu0 %v877_v6 }
  0x85   :  { %710 = vmatpush3.bf16.msra.mxu0 %v709_v12 }
  0x86   :  { %711 = vmatprep.subr.bf16.mxu0 %v877_v6 }
  0x89   :  { %713 = vmatpush3.bf16.msra.mxu0 %v712_v15 }
  0x8a   :  { %714 = vmatprep.subr.bf16.mxu0 %v877_v6 }
  0x8d   :  { %716 = vmatpush3.bf16.msra.mxu0 %v715_v18 }
  0x8e   :  { %717 = vmatprep.subr.bf16.mxu0 %v877_v6 }
  0x91   :  { %719 = vmatpush3.bf16.msra.mxu0 %v718_v21 }
  0x92   :  { %720 = vmatprep.subr.bf16.mxu0 %v877_v6 }
  0x95   :  { %722 = vmatpush3.bf16.msra.mxu0 %v721_v25 }
  0x96   :  { %723 = vmatprep.subr.bf16.mxu0 %v877_v6 }
  0x99   :  { %725 = vmatpush3.bf16.msra.mxu0 %v724_v28 }
 0x14f   :  { %v292_v35 = vpop.f32.mrb[0].mxu0 }
 0x150   :  { %v293_v37 = vadd.f32 %v292_v35, %v209_v34  ;;  %v294_v38 = vpop.f32.mrb[1].mxu0 }
 0x151   :  { %v295_v40 = vadd.f32 %v294_v38, %v213_v36  ;;  %v363_v42 = vpop.f32.mrb[0].mxu1 }
 0x152   :  { %v520_v39 = vmul.f32 -1.442695, %v293_v37  ;;  %v365_v43 = vpop.f32.mrb[1].mxu1  ;;  %v364_v55 = vadd.f32 %v363_v42, %v217_v52 }
 0x153   :  { %v521_v41 = vmul.f32 -1.442695, %v295_v40  ;;  %v366_v53 = vadd.f32 %v365_v43, %v221_v49 }
 0x154   :  { %738 = vpow2.f32 %v520_v39 }
 0x155   :  { %740 = vpow2.f32 %v521_v41 }
 0x15e   :  { %v739_v45 = vpop.eup %738 }
 0x15f   :  { %v371_v46 = vadd.f32 1.0, %v739_v45  ;;  %v741_v50 = vpop.eup %740 }
 0x160   :  { %v377_v51 = vadd.f32 1.0, %v741_v50 }
 0x161   :  { %742 = vrcp.f32 %v371_v46 }
 0x162   :  { %744 = vrcp.f32 %v377_v51 }
 0x16b   :  { %v743_v54 = vpop.eup %742 }
 0x16c   :  { %v380_v56 = vmul.f32 %v743_v54, %v366_v53  ;;  %v745_v58 = vpop.eup %744 }
 0x16d   :  { %v383_v59 = vsub.f32 1.0, %v745_v58  ;;  %v385_v62 = vmul.f32 %v745_v58, %v966_v44 }
 0x16e   :  { %v381_v57 = vadd.f32 %v380_v56, %v364_v55 }
 0x170   :  { %746 = vtanh.f32 %v381_v57 }
 0x17a   :  { %v747_v60 = vpop.eup %746 }
 0x17b   :  { %v384_v61 = vmul.f32 %v747_v60, %v383_v59 }
 0x17d   :  { %v386_v63 = vadd.f32 %v385_v62, %v384_v61 }
 0x17f   :  { %572 = vmatmul.mubr.f32.vlgmr.msra.gmra.mrb[2].mxu0 %v386_v63  ;;  %488 = vst [vmem:[#allocation11] sm:$0x1] %v386_v63 }
 0x252   :  { %v470_v1 = vpop.f32.mrb[2].mxu0 }
 0x253   :  { %v471_v2 = vadd.f32 %v470_v1, %v403_v0  ;;  %v573_v3 = vpop.f32.mrb[3].mxu0 }
 0x255   :  { %v475_v4 = vsel %vm474_vm1, %v471_v2, -inf }
 0x256   :  { %476 = vmax.xlane.f32.xlu0 %v475_v4 }
 0x2e3   :  { %v477_v5 = vpop.xlane.xlu0 %476 }
 0x2e4   :  { %v478_v6 = vsub.f32 %v471_v2, %v477_v5 }
 0x2e6   :  { %v479_v7 = vmul.f32 1.442695, %v478_v6 }
 0x2e8   :  { %748 = vpow2.f32 %v479_v7 }
 0x2f2   :  { %v749_v8 = vpop.eup %748 }
 0x2f3   :  { %v481_v9 = vsel %vm474_vm1, %v749_v8, 0.0 }
 0x2f4   :  { %482 = vadd.xlane.f32.xlu0 %v481_v9 }
 0x2f5   :  { %829 = shalt.err (!%p826_p1)
}
 0x2f6   :  { %s830_s12 = scalar_lea.hbm %s1019_s8, 16 }
 0x2f7   :  { %p831_p2 = scmp.ne.s32.totalorder %s1019_s8, %s830_s12  ;;  %p834_p3 = scmp.lt.u32.totalorder %s830_s12, %s1019_s8 }
 0x2f9   :  { %p836_p4 = pnand %p834_p3, %p831_p2 }
 0x2fb   :  { %839 = shalt.err (!%p836_p4)
}
 0x2fc   :  { %508 = dma.vmem_to_hbm [thread:$0]  %s506_s30, 16, %s1019_s8, [#allocation12]  }
 0x2fd   :  { %s881_s19 = smov [#allocation10]  }
 0x2fe   :  { %s495_s1 = sshll.u32 %s881_s19, 4  ;;  %s496_s1 = int_to_ptr.vmem [resolvable:$true] %s495_s1 }
 0x2ff   :  { %s840_s20 = scalar_lea.vmem %s496_s1, 16  ;;  %s844_s5 = scalar_lea.vmem %s496_s1, 32 }
 0x300   :  { %p841_p5 = scmp.ne.s32.totalorder %s496_s1, %s840_s20  ;;  %p845_p6 = scmp.lt.s32.totalorder %s496_s1, %s496_s1 }
 0x301   :  { %p846_p7 = scmp.lt.s32.totalorder %s844_s5, %s840_s20 }
 0x303   :  { %p847_p8 = por %p846_p7, %p845_p6 }
 0x305   :  { %p848_p9 = pnand %p847_p8, %p841_p5 }
 0x381   :  { %v483_v44 = vpop.xlane.xlu0 %482 }
 0x382   :  { %750 = vlog2.f32 %v483_v44 }
 0x38c   :  { %v751_v10 = vpop.eup %750 }
 0x38d   :  { %v485_v11 = vmul.f32 0.6931472, %v751_v10 }
 0x38f   :  { %v486_v12 = vsub.f32 %v478_v6, %v485_v11 }
 0x391   :  { %487 = vst [vmem:[#allocation10] sm:$0x1] %v486_v12 }
 0x392   :  { %851 = shalt.err (!%p848_p9)
}
 0x393   :  { %s852_s8 = scalar_lea.hbm %s1018_s7, 16 }
 0x394   :  { %p853_p10 = scmp.ne.s32.totalorder %s1018_s7, %s852_s8  ;;  %p856_p11 = scmp.lt.u32.totalorder %s852_s8, %s1018_s7 }
 0x396   :  { %p858_p12 = pnand %p856_p11, %p853_p10 }
 0x398   :  { %861 = shalt.err (!%p858_p12)
}
 0x399   :  { %498 = dma.vmem_to_hbm [thread:$0]  %s496_s1, 16, %s1018_s7, [#allocation6]  }
 0x39a   :  { %866 = dma.done.wait [#allocation6], 16  }
 0x39b   :  { %867 = vsyncadd [#allocation6], 4294967280 }
 0x39c   :  { %868 = dma.done.wait [#allocation12], 16  }
 0x39d   :  { %869 = vsyncadd [#allocation12], 4294967280 }
 0x39e   :  { %515 = vsyncpa [#allocation5], 1 }
 0x39f   :  { %516 = vsyncpa [#allocation8], 1 }
 0x3a0   :  { %517 = vsyncpa [#allocation6], 1 }
 0x3a1   :  { %518 = vsyncpa [#allocation12], 1 }

</bundles_post_ra>
